<compile_context>
chip_gen: v6e
topology: v6e:2x2x1
jax: 0.10.0
libtpu: 0.0.40
codegen_flags: <defaults>
</compile_context>

<pallas_src>
import math

import jax
import jax.numpy as jnp
from jax.experimental import pallas as pl
from jax.experimental.pallas import tpu as pltpu


def _normalize_kernel(x_ref, mean_ref, inv_ref, o_ref):
    # x_ref/o_ref: (TR, W) tile; mean_ref/inv_ref: (1, W) f32, broadcast over rows.
    x = x_ref[...].astype(jnp.float32)
    o_ref[...] = ((x - mean_ref[...]) * inv_ref[...]).astype(o_ref.dtype)


def _round_up(a: int, b: int) -> int:
    return -(-a // b) * b


def _cdiv(a: int, b: int) -> int:
    return -(-a // b)


def _chip_config():
    """Per-generation tile sizing; conservative default if detection fails."""
    try:
        kind = jax.devices()[0].device_kind.lower()
    except Exception:
        kind = ""
    if "7" in kind:
        # v7x: 2 TensorCores, 64 MiB VMEM/TC (32 MiB scoped default) ->
        # big tiles + explicit vmem limit, even grid across the 2 TCs.
        return dict(tile_bytes=8 << 20, vmem_limit=48 << 20, num_tc=2)
    # v5e / v6e: single TC, already on the HBM roofline plateau at ~2 MiB
    # tiles; 4 buffers x 2 MiB fits the 16 MiB v5e scoped default exactly.
    return dict(tile_bytes=2 << 20, vmem_limit=None, num_tc=1)


def normalize(x: jax.Array, mean: jax.Array, std: jax.Array) -> jax.Array:
    """(x - mean) / (std + 1e-8); mean/std broadcast over all but the last dim."""
    orig_shape = x.shape
    h = orig_shape[-1]
    x2 = x.reshape(-1, h)
    rows = x2.shape[0]

    cfg = _chip_config()
    target_tile_bytes = cfg["tile_bytes"]
    num_tc = cfg["num_tc"]

    dtype_bytes = jnp.dtype(x.dtype).itemsize
    # Sublane multiple for packed dtypes: 8 (f32), 16 (bf16), 32 (int8/fp8).
    sub = {4: 8, 2: 16, 1: 32}.get(dtype_bytes, 8)

    # Lane-dense packing factor: fold k rows into the lane axis so the last dim
    # is a multiple of 128 (unmasked vst), unless a single packed row would
    # blow the tile budget.
    if h % 128 == 0:
        k = 1
    else:
        k = math.lcm(h, 128) // h
        if k * h * dtype_bytes > target_tile_bytes:
            # Pathologically wide feature dim: keep raw H layout. Stores become
            # masked vst.msk — a perf cliff, not a correctness issue.
            k = 1
    w = k * h

    # Only the k-alignment pad (needed for the packing reshape). No tile-size
    # padding: the grid uses cdiv and Mosaic masks the partial final block.
    rows_k = _round_up(rows, k)
    padded = rows_k != rows
    if padded:
        x2 = jnp.pad(x2, ((0, rows_k - rows), (0, 0)))
    pr = rows_k // k
    xp = x2.reshape(pr, w)

    # Row-tile size. block_shape need not divide the array; last two dims must
    # be (sub,128)-aligned or equal the full array dims.
    if pr <= sub or pr * w * dtype_bytes <= target_tile_bytes:
        tr = pr  # single block equal to the full array dims (always legal)
    else:
        tr_budget = max(sub, (target_tile_bytes // (w * dtype_bytes)) // sub * sub)
        steps = _cdiv(pr, tr_budget)
        if num_tc > 1 and steps > 1:
            # Even step count so both v7x TensorCores stay busy.
            steps = _round_up(steps, num_tc)
        tr = max(sub, min(tr_budget, _round_up(_cdiv(pr, steps), sub)))
    grid = (_cdiv(pr, tr),)

    # Hoist the per-feature reciprocal out of the kernel; numerically identical
    # to the (x - mean) * (1 / (std + 1e-8)) the kernel computed per step.
    mean_f = jnp.asarray(mean, jnp.float32).reshape(1, h)
    inv_f = 1.0 / (jnp.asarray(std, jnp.float32).reshape(1, h) + 1e-8)
    mean_w = jnp.tile(mean_f, (1, k))
    inv_w = jnp.tile(inv_f, (1, k))

    cost = pl.CostEstimate(
        flops=2 * rows * h,
        transcendentals=0,
        bytes_accessed=2 * rows * h * dtype_bytes + 2 * 4 * w,
    )
    if cfg["vmem_limit"] is not None:
        compiler_params = pltpu.CompilerParams(
            dimension_semantics=("parallel",),
            vmem_limit_bytes=cfg["vmem_limit"],
        )
    else:
        compiler_params = pltpu.CompilerParams(dimension_semantics=("parallel",))

    out = pl.pallas_call(
        _normalize_kernel,
        out_shape=jax.ShapeDtypeStruct((pr, w), x.dtype),
        grid_spec=pltpu.PrefetchScalarGridSpec(
            num_scalar_prefetch=0,
            grid=grid,
            in_specs=[
                pl.BlockSpec((tr, w), lambda i: (i, 0)),   # x tile (streams)
                pl.BlockSpec((1, w), lambda i: (0, 0)),    # mean (broadcast, f32)
                pl.BlockSpec((1, w), lambda i: (0, 0)),    # 1/(std+eps) (broadcast, f32)
            ],
            out_specs=pl.BlockSpec((tr, w), lambda i: (i, 0)),
        ),
        compiler_params=compiler_params,
        cost_estimate=cost,
    )(xp, mean_w, inv_w)

    out = out.reshape(rows_k, h)
    if padded:
        out = out[:rows]
    return out.reshape(orig_shape)


if __name__ == "__main__":
    key = jax.random.PRNGKey(0)
    kx, km, ks = jax.random.split(key, 3)

    batch, seq, hidden = 2, 8, 32
    x = jax.random.normal(kx, (batch, seq, hidden), dtype=jnp.float32)

    # Deterministic synthetic buffers (per-feature mean/std, as in the module).
    mean = jax.random.normal(km, (hidden,), dtype=jnp.float32)
    std = jax.random.uniform(ks, (hidden,), dtype=jnp.float32,
                             minval=0.5, maxval=2.0)

    out = normalize(x, mean, std)
    jax.block_until_ready(out)

    # Reference check in plain JAX (same math as the PyTorch module).
    ref = (x - mean) / (std + 1e-8)
    assert out.shape == x.shape and out.dtype == x.dtype
    assert jnp.allclose(out, ref, atol=1e-5, rtol=1e-5)

    print("KERNEL_OK")
</pallas_src>

<mosaic_0001>
module attributes {stable_mosaic.version = 11 : i64} {
  func.func @_normalize_kernel(%arg0: i32, %arg1: memref<4x128xf32, #tpu.memory_space<vmem>>, %arg2: memref<1x128xf32, #tpu.memory_space<vmem>>, %arg3: memref<1x128xf32, #tpu.memory_space<vmem>>, %arg4: memref<4x128xf32, #tpu.memory_space<vmem>>) attributes {dimension_semantics = [#tpu.dimension_semantics<parallel>], iteration_bounds = array<i64: 1>, scalar_prefetch = 0 : i64, scratch_operands = 0 : i64, tpu.core_type = #tpu.core_type<tc>, window_params = [{transform_indices = @transform_0, window_bounds = array<i64: 4, 128>}, {pipeline_mode = #tpu.pipeline_mode<synchronous>, transform_indices = @transform_1, window_bounds = array<i64: 1, 128>}, {pipeline_mode = #tpu.pipeline_mode<synchronous>, transform_indices = @transform_2, window_bounds = array<i64: 1, 128>}, {transform_indices = @transform_3, window_bounds = array<i64: 4, 128>}]} {
    %c0 = arith.constant 0 : index
    %c0_0 = arith.constant 0 : index
    %0 = vector.load %arg1[%c0, %c0_0] : memref<4x128xf32, #tpu.memory_space<vmem>>, vector<4x128xf32>
    %c0_1 = arith.constant 0 : index
    %c0_2 = arith.constant 0 : index
    %1 = vector.load %arg2[%c0_1, %c0_2] : memref<1x128xf32, #tpu.memory_space<vmem>>, vector<1x128xf32>
    %2 = vector.broadcast %1 : vector<1x128xf32> to vector<4x128xf32>
    %3 = arith.subf %0, %2 : vector<4x128xf32>
    %c0_3 = arith.constant 0 : index
    %c0_4 = arith.constant 0 : index
    %4 = vector.load %arg3[%c0_3, %c0_4] : memref<1x128xf32, #tpu.memory_space<vmem>>, vector<1x128xf32>
    %5 = vector.broadcast %4 : vector<1x128xf32> to vector<4x128xf32>
    %6 = arith.mulf %3, %5 : vector<4x128xf32>
    %c0_5 = arith.constant 0 : index
    %c0_6 = arith.constant 0 : index
    %7 = vector.load %arg4[%c0_5, %c0_6] : memref<4x128xf32, #tpu.memory_space<vmem>>, vector<4x128xf32>
    tpu.vector_store %arg4[%c0_5, %c0_6], %6 {strides = array<i32>} : memref<4x128xf32, #tpu.memory_space<vmem>>, vector<4x128xf32>,
    return
  }
  func.func @transform_0(%arg0: i32) -> (i32, i32) {
    %c0_i32 = arith.constant 0 : i32
    %c0_i32_0 = arith.constant 0 : i32
    return %arg0, %c0_i32 : i32, i32
  }
  func.func @transform_1(%arg0: i32) -> (i32, i32) {
    %c0_i32 = arith.constant 0 : i32
    %c0_i32_0 = arith.constant 0 : i32
    %c0_i32_1 = arith.constant 0 : i32
    return %c0_i32, %c0_i32_0 : i32, i32
  }
  func.func @transform_2(%arg0: i32) -> (i32, i32) {
    %c0_i32 = arith.constant 0 : i32
    %c0_i32_0 = arith.constant 0 : i32
    %c0_i32_1 = arith.constant 0 : i32
    return %c0_i32, %c0_i32_0 : i32, i32
  }
  func.func @transform_3(%arg0: i32) -> (i32, i32) {
    %c0_i32 = arith.constant 0 : i32
    %c0_i32_0 = arith.constant 0 : i32
    return %arg0, %c0_i32 : i32, i32
  }
}

</mosaic_0001>

<bundles_post_ra>
// kernel: tpu_custom_call.1
= control target key start
LH: loop header
LB: loop body
LE: loop exit
PB: predicated region body
PF: predicated region fallthrough
CT: control target
= control target key end

     0   :  { %8 = vsyncpa [#allocation3], 0  ;;  %s142_s0 = inlined_call_operand.hbm [shape: f32[4,128], index: 0, kind: input, shape index: {}]   ;;  %s143_s1 = inlined_call_operand.vmem [shape: f32[1,128], index: 1, kind: input, shape index: {}]   ;;  %s144_s2 = inlined_call_operand.vmem [shape: f32[1,128], index: 2, kind: input, shape index: {}]   ;;  %s145_s3 = inlined_call_operand.hbm [shape: f32[4,128], index: 3, kind: output, shape index: {}]  }
   0x1   :  { %9 = vsyncpa [#allocation4], 0  ;;  %s108_s12 = smov [#allocation2]  }
   0x2   :  { %s16_s13 = sshll.u32 %s108_s12, 4  ;;  %s17_s13 = int_to_ptr.vmem [resolvable:$true] %s16_s13 }
   0x3   :  { %s72_s14 = scalar_lea.vmem %s17_s13, 64  ;;  %p77_p1 = scmp.lt.s32.totalorder %s17_s13, %s17_s13 }
   0x4   :  { %p73_p0 = scmp.ne.s32.totalorder %s17_s13, %s72_s14  ;;  %p78_p2 = scmp.lt.s32.totalorder %s72_s14, %s72_s14 }
   0x6   :  { %p79_p3 = por %p78_p2, %p77_p1 }
   0x8   :  { %p80_p4 = pnand %p79_p3, %p73_p0 }
   0xa   :  { %83 = shalt.err (!%p80_p4)
}
   0xb   :  { %19 = dma.hbm_to_vmem [thread:$0]  %s142_s0, 64, %s17_s13, [#allocation3]  }
   0xc   :  { %104 = dma.done.wait [#allocation3], 64  }
   0xd   :  { %105 = vsyncadd [#allocation3], 4294967232  ;;  %s109_s17 = smov [#allocation5]   ;;  %v27_v0 = vld [vmem:[#allocation2] sm:$0xf] }
   0xe   :  { %s51_s18 = sshll.u32 %s109_s17, 4  ;;  %v60_v1 = vld [vmem:[%s143_s1] ss:$0 sm:$0xff]  ;;  %s52_s18 = int_to_ptr.vmem [resolvable:$true] %s51_s18 }
   0xf   :  { %v61_v2 = vld [vmem:[%s144_s2] ss:$0 sm:$0xff]  ;;  %v35_v3 = vsub.f32 %v27_v0, %v60_v1  ;;  %s84_s23 = scalar_lea.vmem %s52_s18, 64  ;;  %p89_p6 = scmp.lt.s32.totalorder %s52_s18, %s52_s18 }
  0x10   :  { %p85_p5 = scmp.ne.s32.totalorder %s52_s18, %s84_s23  ;;  %p90_p7 = scmp.lt.s32.totalorder %s84_s23, %s84_s23 }
  0x11   :  { %v43_v4 = vmul.f32 %v61_v2, %v35_v3 }
  0x12   :  { %p91_p8 = por %p90_p7, %p89_p6 }
  0x13   :  { %44 = vst [vmem:[#allocation5] sm:$0xf] %v43_v4 }
  0x14   :  { %p92_p9 = pnand %p91_p8, %p85_p5 }
  0x16   :  { %95 = shalt.err (!%p92_p9)
}
  0x17   :  { %54 = dma.vmem_to_hbm [thread:$0]  %s52_s18, 64, %s145_s3, [#allocation4]  }
  0x18   :  { %106 = dma.done.wait [#allocation4], 64  }
  0x19   :  { %107 = vsyncadd [#allocation4], 4294967232 }
  0x1a   :  { %58 = vsyncpa [#allocation3], 1 }
  0x1b   :  { %59 = vsyncpa [#allocation4], 1 }

</bundles_post_ra>
